<compile_context>
chip_gen: v5e
topology: v5e:2x2
jax: 0.10.0
libtpu: 0.0.40
codegen_flags: <defaults>
</compile_context>

<pallas_src>
import jax
import jax.numpy as jnp
from jax import lax
from jax.experimental import pallas as pl
from jax.experimental.pallas import tpu as pltpu

IN_CHANNELS = 3
OUT_CHANNELS = 16
KERNEL_SIZE = 3

K_ROWS = 32                    # 27 conv taps + 1 bias row, zero-padded to 32 (MXU K dim)
MAX_PIXELS_PER_STEP = 32768    # keeps per-step VMEM (~5 MiB) well under all gens' limits


def _round_up(a: int, m: int) -> int:
    return (a + m - 1) // m * m


def _make_kernel(img_w: int):
    def kernel(x_ref, w_ref, o_ref, im2col_ref):
        # x_ref:      (1, C_in, n_in)   lane-dense flattened (image, h, w) pixels (+halo)
        # w_ref:      (C_out, K_ROWS)   [scaled conv weights | scaled bias | zeros]
        # o_ref:      (1, 1, n_out)     lane-dense output row
        # im2col_ref: (K_ROWS, n_out)   VMEM scratch
        n_out = o_ref.shape[-1]
        x2d = x_ref[0]                                   # (C_in, n_in), loaded once

        # Build im2col rows from 9 static lane-shifted views of all 3 channels at once.
        for kh in range(KERNEL_SIZE):
            for kw in range(KERNEL_SIZE):
                shift = kh * img_w + kw                  # window offset == flat shift
                row = IN_CHANNELS * (kh * KERNEL_SIZE + kw)
                im2col_ref[row:row + IN_CHANNELS, :] = x2d[:, shift:shift + n_out]
        # Bias row (ones) + explicit zero padding rows up to K_ROWS.
        im2col_ref[27:28, :] = jnp.ones((1, n_out), jnp.float32)
        im2col_ref[28:K_ROWS, :] = jnp.zeros((K_ROWS - 28, n_out), jnp.float32)

        # (16, 32) x (32, n_out) on the MXU; f32 accumulation, full-precision passes.
        acc = jnp.dot(w_ref[...], im2col_ref[...],
                      preferred_element_type=jnp.float32,
                      precision=jax.lax.Precision.HIGHEST)          # (C_out, n_out)

        # Channel-wise min: 16-row sublane reduce; result stays lane-dense.
        o_ref[0] = jnp.min(acc, axis=0, keepdims=True)
    return kernel


def fused_conv_min(x, weight, bias, scale_factor=2.0):
    """x: (B, 3, H, W) f32; weight: (16, 3, 3, 3); bias: (16,).
    Returns (B, 1, H-2, W-2) f32 == min_c((conv_valid(x, w) + b) * scale_factor)."""
    x = x.astype(jnp.float32)
    B, C, H, W = x.shape
    assert C == IN_CHANNELS
    H_out, W_out = H - KERNEL_SIZE + 1, W - KERNEL_SIZE + 1
    n_img = H * W

    # ---- fold scale into the parameters; bias becomes an extra matmul column -------
    w_scaled = weight.astype(jnp.float32) * scale_factor            # (16, 3, 3, 3)
    # im2col row order is (kh, kw, ic)
    w27 = jnp.transpose(w_scaled, (0, 2, 3, 1)).reshape(OUT_CHANNELS, 27)
    b_col = (bias.astype(jnp.float32) * scale_factor)[:, None]      # (16, 1)
    w_aug = jnp.concatenate(
        [w27, b_col, jnp.zeros((OUT_CHANNELS, K_ROWS - 28), jnp.float32)], axis=1)

    # ---- pack images into lane-dense groups -----------------------------------------
    # Collapse the grid while per-step work is tiny; split into multiple "parallel"
    # groups (feeds both v7x TensorCores) once a group reaches MAX_PIXELS_PER_STEP.
    imgs_per_step = max(1, min(B, MAX_PIXELS_PER_STEP // n_img))
    num_groups = pl.cdiv(B, imgs_per_step)
    # TODO(synk): add H-band tiling with a 2-row halo for single images larger than
    #             MAX_PIXELS_PER_STEP so per-step VMEM stays bounded on v7x.
    b_pad = num_groups * imgs_per_step
    if b_pad != B:
        x = jnp.pad(x, ((0, b_pad - B), (0, 0), (0, 0), (0, 0)))

    n_valid = imgs_per_step * n_img
    n_out = _round_up(n_valid, 128)                         # lane-dense output width
    max_shift = (KERNEL_SIZE - 1) * W + (KERNEL_SIZE - 1)
    n_in = _round_up(n_out + max_shift, 128)                # + shift halo

    x_groups = x.reshape(num_groups, imgs_per_step, C, n_img)
    x_groups = jnp.transpose(x_groups, (0, 2, 1, 3)).reshape(num_groups, C, n_valid)
    x_groups = jnp.pad(x_groups, ((0, 0), (0, 0), (0, n_in - n_valid)))

    out_flat = pl.pallas_call(
        _make_kernel(W),
        out_shape=jax.ShapeDtypeStruct((num_groups, 1, n_out), jnp.float32),
        grid_spec=pltpu.PrefetchScalarGridSpec(
            num_scalar_prefetch=0,
            grid=(num_groups,),
            in_specs=[
                pl.BlockSpec((1, C, n_in), lambda g: (g, 0, 0)),
                pl.BlockSpec((OUT_CHANNELS, K_ROWS), lambda g: (0, 0)),
            ],
            out_specs=pl.BlockSpec((1, 1, n_out), lambda g: (g, 0, 0)),
            scratch_shapes=[pltpu.VMEM((K_ROWS, n_out), jnp.float32)],
        ),
        compiler_params=pltpu.CompilerParams(
            dimension_semantics=("parallel",),
            vmem_limit_bytes=32 * 1024 * 1024,
        ),
    )(x_groups, w_aug)

    # Un-flatten: groups -> images -> (H, W), then drop the 2-pixel conv margin.
    out_imgs = out_flat[:, 0, :n_valid].reshape(b_pad, H, W)
    return out_imgs[:B, None, :H_out, :W_out]


def _reference(x, weight, bias, scale_factor):
    out = lax.conv_general_dilated(
        x, weight, window_strides=(1, 1), padding="VALID",
        dimension_numbers=("NCHW", "OIHW", "NCHW"),
        precision=jax.lax.Precision.HIGHEST)
    out = (out + bias[None, :, None, None]) * scale_factor
    return jnp.min(out, axis=1, keepdims=True)


if __name__ == "__main__":
    key = jax.random.PRNGKey(0)
    kx, kw_, kb = jax.random.split(key, 3)

    B, H, W = 2, 16, 16
    scale = 2.0
    x = jax.random.normal(kx, (B, IN_CHANNELS, H, W), dtype=jnp.float32)

    # Deterministic init mimicking kaiming_uniform(a=sqrt(5)) / uniform(+-1/sqrt(fan_in)).
    fan_in = IN_CHANNELS * KERNEL_SIZE * KERNEL_SIZE
    bound = 1.0 / (fan_in ** 0.5)
    weight = jax.random.uniform(
        kw_, (OUT_CHANNELS, IN_CHANNELS, KERNEL_SIZE, KERNEL_SIZE),
        minval=-bound, maxval=bound, dtype=jnp.float32)
    bias = jax.random.uniform(kb, (OUT_CHANNELS,), minval=-bound, maxval=bound,
                              dtype=jnp.float32)

    fused = jax.jit(fused_conv_min)
    out = jax.block_until_ready(fused(x, weight, bias, scale))

    ref = _reference(x, weight, bias, scale)
    assert out.shape == (B, 1, H - 2, W - 2), out.shape
    # Tolerance covers MXU multi-pass f32 rounding vs. the XLA conv reference.
    assert jnp.allclose(out, ref, atol=2e-3, rtol=2e-3), \
        float(jnp.max(jnp.abs(out - ref)))
    print("KERNEL_OK")
</pallas_src>

<mosaic_0001>
module attributes {stable_mosaic.version = 11 : i64} {
  func.func @kernel(%arg0: i32, %arg1: memref<1x3x640xf32, #tpu.memory_space<vmem>>, %arg2: memref<16x32xf32, #tpu.memory_space<vmem>>, %arg3: memref<1x1x512xf32, #tpu.memory_space<vmem>>, %arg4: memref<32x512xf32, #tpu.memory_space<vmem>>) attributes {dimension_semantics = [#tpu.dimension_semantics<parallel>], iteration_bounds = array<i64: 1>, scalar_prefetch = 0 : i64, scratch_operands = 1 : i64, tpu.core_type = #tpu.core_type<tc>, window_params = [{transform_indices = @transform_0, window_bounds = array<i64: 1, 3, 640>}, {pipeline_mode = #tpu.pipeline_mode<synchronous>, transform_indices = @transform_1, window_bounds = array<i64: 16, 32>}, {transform_indices = @transform_2, window_bounds = array<i64: 1, 1, 512>}]} {
    %c0 = arith.constant 0 : index
    %c0_0 = arith.constant 0 : index
    %c0_1 = arith.constant 0 : index
    %0 = vector.load %arg1[%c0, %c0_0, %c0_1] : memref<1x3x640xf32, #tpu.memory_space<vmem>>, vector<1x3x640xf32>
    %1 = vector.shape_cast %0 : vector<1x3x640xf32> to vector<3x640xf32>
    %2 = vector.extract_strided_slice %1 {offsets = [0, 0], sizes = [3, 512], strides = [1, 1]} : vector<3x640xf32> to vector<3x512xf32>
    %c0_2 = arith.constant 0 : index
    %c0_3 = arith.constant 0 : index
    %3 = vector.load %arg4[%c0_2, %c0_3] : memref<32x512xf32, #tpu.memory_space<vmem>>, vector<3x512xf32>
    tpu.vector_store %arg4[%c0_2, %c0_3], %2 {strides = array<i32>} : memref<32x512xf32, #tpu.memory_space<vmem>>, vector<3x512xf32>,
    %4 = vector.extract_strided_slice %1 {offsets = [0, 1], sizes = [3, 512], strides = [1, 1]} : vector<3x640xf32> to vector<3x512xf32>
    %c3 = arith.constant 3 : index
    %c0_4 = arith.constant 0 : index
    %5 = vector.load %arg4[%c3, %c0_4] : memref<32x512xf32, #tpu.memory_space<vmem>>, vector<3x512xf32>
    tpu.vector_store %arg4[%c3, %c0_4], %4 {strides = array<i32>} : memref<32x512xf32, #tpu.memory_space<vmem>>, vector<3x512xf32>,
    %6 = vector.extract_strided_slice %1 {offsets = [0, 2], sizes = [3, 512], strides = [1, 1]} : vector<3x640xf32> to vector<3x512xf32>
    %c6 = arith.constant 6 : index
    %c0_5 = arith.constant 0 : index
    %7 = vector.load %arg4[%c6, %c0_5] : memref<32x512xf32, #tpu.memory_space<vmem>>, vector<3x512xf32>
    tpu.vector_store %arg4[%c6, %c0_5], %6 {strides = array<i32>} : memref<32x512xf32, #tpu.memory_space<vmem>>, vector<3x512xf32>,
    %8 = vector.extract_strided_slice %1 {offsets = [0, 16], sizes = [3, 512], strides = [1, 1]} : vector<3x640xf32> to vector<3x512xf32>
    %c9 = arith.constant 9 : index
    %c0_6 = arith.constant 0 : index
    %9 = vector.load %arg4[%c9, %c0_6] : memref<32x512xf32, #tpu.memory_space<vmem>>, vector<3x512xf32>
    tpu.vector_store %arg4[%c9, %c0_6], %8 {strides = array<i32>} : memref<32x512xf32, #tpu.memory_space<vmem>>, vector<3x512xf32>,
    %10 = vector.extract_strided_slice %1 {offsets = [0, 17], sizes = [3, 512], strides = [1, 1]} : vector<3x640xf32> to vector<3x512xf32>
    %c12 = arith.constant 12 : index
    %c0_7 = arith.constant 0 : index
    %11 = vector.load %arg4[%c12, %c0_7] : memref<32x512xf32, #tpu.memory_space<vmem>>, vector<3x512xf32>
    tpu.vector_store %arg4[%c12, %c0_7], %10 {strides = array<i32>} : memref<32x512xf32, #tpu.memory_space<vmem>>, vector<3x512xf32>,
    %12 = vector.extract_strided_slice %1 {offsets = [0, 18], sizes = [3, 512], strides = [1, 1]} : vector<3x640xf32> to vector<3x512xf32>
    %c15 = arith.constant 15 : index
    %c0_8 = arith.constant 0 : index
    %13 = vector.load %arg4[%c15, %c0_8] : memref<32x512xf32, #tpu.memory_space<vmem>>, vector<3x512xf32>
    tpu.vector_store %arg4[%c15, %c0_8], %12 {strides = array<i32>} : memref<32x512xf32, #tpu.memory_space<vmem>>, vector<3x512xf32>,
    %14 = vector.extract_strided_slice %1 {offsets = [0, 32], sizes = [3, 512], strides = [1, 1]} : vector<3x640xf32> to vector<3x512xf32>
    %c18 = arith.constant 18 : index
    %c0_9 = arith.constant 0 : index
    %15 = vector.load %arg4[%c18, %c0_9] : memref<32x512xf32, #tpu.memory_space<vmem>>, vector<3x512xf32>
    tpu.vector_store %arg4[%c18, %c0_9], %14 {strides = array<i32>} : memref<32x512xf32, #tpu.memory_space<vmem>>, vector<3x512xf32>,
    %16 = vector.extract_strided_slice %1 {offsets = [0, 33], sizes = [3, 512], strides = [1, 1]} : vector<3x640xf32> to vector<3x512xf32>
    %c21 = arith.constant 21 : index
    %c0_10 = arith.constant 0 : index
    %17 = vector.load %arg4[%c21, %c0_10] : memref<32x512xf32, #tpu.memory_space<vmem>>, vector<3x512xf32>
    tpu.vector_store %arg4[%c21, %c0_10], %16 {strides = array<i32>} : memref<32x512xf32, #tpu.memory_space<vmem>>, vector<3x512xf32>,
    %18 = vector.extract_strided_slice %1 {offsets = [0, 34], sizes = [3, 512], strides = [1, 1]} : vector<3x640xf32> to vector<3x512xf32>
    %c24 = arith.constant 24 : index
    %c0_11 = arith.constant 0 : index
    %19 = vector.load %arg4[%c24, %c0_11] : memref<32x512xf32, #tpu.memory_space<vmem>>, vector<3x512xf32>
    tpu.vector_store %arg4[%c24, %c0_11], %18 {strides = array<i32>} : memref<32x512xf32, #tpu.memory_space<vmem>>, vector<3x512xf32>,
    %cst = arith.constant 1.000000e+00 : f32
    %20 = vector.broadcast %cst : f32 to vector<1x512xf32>
    %c27 = arith.constant 27 : index
    %c0_12 = arith.constant 0 : index
    %21 = vector.load %arg4[%c27, %c0_12] : memref<32x512xf32, #tpu.memory_space<vmem>>, vector<1x512xf32>
    tpu.vector_store %arg4[%c27, %c0_12], %20 {strides = array<i32>} : memref<32x512xf32, #tpu.memory_space<vmem>>, vector<1x512xf32>,
    %cst_13 = arith.constant 0.000000e+00 : f32
    %22 = vector.broadcast %cst_13 : f32 to vector<4x512xf32>
    %c28 = arith.constant 28 : index
    %c0_14 = arith.constant 0 : index
    %23 = vector.load %arg4[%c28, %c0_14] : memref<32x512xf32, #tpu.memory_space<vmem>>, vector<4x512xf32>
    tpu.vector_store %arg4[%c28, %c0_14], %22 {strides = array<i32>} : memref<32x512xf32, #tpu.memory_space<vmem>>, vector<4x512xf32>,
    %c0_15 = arith.constant 0 : index
    %c0_16 = arith.constant 0 : index
    %24 = vector.load %arg2[%c0_15, %c0_16] : memref<16x32xf32, #tpu.memory_space<vmem>>, vector<16x32xf32>
    %c0_17 = arith.constant 0 : index
    %c0_18 = arith.constant 0 : index
    %25 = vector.load %arg4[%c0_17, %c0_18] : memref<32x512xf32, #tpu.memory_space<vmem>>, vector<32x512xf32>
    %cst_19 = arith.constant dense<0.000000e+00> : vector<16x512xf32>
    %26 = tpu.matmul %24, %25, %cst_19 {dimension_numbers = #tpu.dot_dimension_numbers<[1], [0], [0], [1], [0, 0, 1, 1], [], []>, precision = #tpu.contract_precision<fp32>} : vector<16x32xf32>, vector<32x512xf32>, vector<16x512xf32> -> vector<16x512xf32>
    %cst_20 = arith.constant dense<0x7F800000> : vector<512xf32>
    %27 = vector.multi_reduction <minimumf>, %26, %cst_20 [0] : vector<16x512xf32> to vector<512xf32>
    %28 = vector.shape_cast %27 : vector<512xf32> to vector<1x512xf32>
    %c0_21 = arith.constant 0 : index
    %c0_22 = arith.constant 0 : index
    %c0_23 = arith.constant 0 : index
    %29 = vector.load %arg3[%c0_21, %c0_22, %c0_23] : memref<1x1x512xf32, #tpu.memory_space<vmem>>, vector<1x1x512xf32>
    %30 = vector.shape_cast %29 : vector<1x1x512xf32> to vector<1x512xf32>
    %31 = vector.shape_cast %28 : vector<1x512xf32> to vector<1x1x512xf32>
    tpu.vector_store %arg3[%c0_21, %c0_22, %c0_23], %31 {strides = array<i32>} : memref<1x1x512xf32, #tpu.memory_space<vmem>>, vector<1x1x512xf32>,
    return
  }
  func.func @transform_0(%arg0: i32) -> (i32, i32, i32) {
    %c0_i32 = arith.constant 0 : i32
    %c0_i32_0 = arith.constant 0 : i32
    %c0_i32_1 = arith.constant 0 : i32
    return %arg0, %c0_i32, %c0_i32_0 : i32, i32, i32
  }
  func.func @transform_1(%arg0: i32) -> (i32, i32) {
    %c0_i32 = arith.constant 0 : i32
    %c0_i32_0 = arith.constant 0 : i32
    %c0_i32_1 = arith.constant 0 : i32
    return %c0_i32, %c0_i32_0 : i32, i32
  }
  func.func @transform_2(%arg0: i32) -> (i32, i32, i32) {
    %c0_i32 = arith.constant 0 : i32
    %c0_i32_0 = arith.constant 0 : i32
    %c0_i32_1 = arith.constant 0 : i32
    return %arg0, %c0_i32, %c0_i32_0 : i32, i32, i32
  }
}

</mosaic_0001>

<bundles_post_ra>
// kernel: squeeze.1
= control target key start
LH: loop header
LB: loop body
LE: loop exit
PB: predicated region body
PF: predicated region fallthrough
CT: control target
= control target key end

     0   :  { %s66_s8 = smov 80   ;;  %s67_s9 = smov 48   ;;  %vm7_vm0 = vcmask 130048   ;;  %s117_s0 = inlined_call_operand.vmem [shape: f32[512], index: 0, kind: input, shape index: {}]   ;;  %s118_s1 = inlined_call_operand.vmem [shape: f32[2,16,16], index: 1, kind: output, shape index: {}]  }
   0x1   :  { %v4_v0 = vld [vmem:[%s117_s0] sm:$0xf]  ;;  %s65_s0 = smov 112   ;;  %s68_s10 = smov 96  }
   0x2   :  { %5 = vst [vmem:[#allocation0] sm:$0xf] %v4_v0  ;;  %s69_s11 = smov 64   ;;  %s70_s12 = smov 32  }
   0x3   :  { %s71_s13 = smov 16  }
   0x9   :  { %v9_v1 = vld [vmem:[#allocation0] sm:$0xf]  }
   0xa   :  { %v21_v2 = vld [vmem:[#allocation0] sm:$0xf]   ;;  %10 = vrot.lane.b32.xlu0 %v9_v1, %s65_s0 }
   0xb   :  { %22 = vrot.lane.b32.xlu1 %v21_v2, %s66_s8  ;;  %v33_v3 = vld [vmem:[#allocation0] sm:$0xf]  }
   0xc   :  { %34 = vrot.lane.b32.xlu2 %v33_v3, %s67_s9  ;;  %v15_v4 = vld [vmem:[#allocation0] sm:$0xf]  }
   0xd   :  { %v27_v5 = vld [vmem:[#allocation0] sm:$0xf]  }
   0xe   :  { %v39_v6 = vld [vmem:[#allocation0] sm:$0xf]  }
   0xf   :  { %v45_v7 = vld [vmem:[#allocation0] sm:$0xf]  }
  0x10   :  { %v6_v8 = vld [vmem:[#allocation0] sm:$0xf]  }
  0x11   :  { %8 = vst.msk [vmem:[%s118_s1] ss:$8 sm:$0xf] %vm7_vm0, %v6_v8  }
  0x12   :  { %16 = vrot.lane.b32.xlu0 %v15_v4, %s68_s10 }
  0x13   :  { %28 = vrot.lane.b32.xlu1 %v27_v5, %s69_s11 }
  0x14   :  { %40 = vrot.lane.b32.xlu2 %v39_v6, %s70_s12 }
  0x1a   :  { %46 = vrot.lane.b32.xlu0 %v45_v7, %s71_s13 }
  0x66   :  { %v35_v9 = vpop.permute.xlu2 %34  }
  0x67   :  { %55 = vst.msk [vmem:[%s118_s1 + $0x5] ss:$8 sm:$0xf] %vm7_vm0, %v35_v9  }
  0x6e   :  { %v41_v10 = vpop.permute.xlu2 %40  }
  0x6f   :  { %56 = vst.msk [vmem:[%s118_s1 + $0x6] ss:$8 sm:$0xf] %vm7_vm0, %v41_v10  }
  0x7c   :  { %v11_v11 = vpop.permute.xlu0 %10  }
  0x7d   :  { %v23_v12 = vpop.permute.xlu1 %22   ;;  %51 = vst.msk [vmem:[%s118_s1 + $0x1] ss:$8 sm:$0xf] %vm7_vm0, %v11_v11  }
  0x7e   :  { %53 = vst.msk [vmem:[%s118_s1 + $0x3] ss:$8 sm:$0xf] %vm7_vm0, %v23_v12  }
  0x84   :  { %v17_v13 = vpop.permute.xlu0 %16  }
  0x85   :  { %v29_v14 = vpop.permute.xlu1 %28   ;;  %52 = vst.msk [vmem:[%s118_s1 + $0x2] ss:$8 sm:$0xf] %vm7_vm0, %v17_v13  }
  0x86   :  { %54 = vst.msk [vmem:[%s118_s1 + $0x4] ss:$8 sm:$0xf] %vm7_vm0, %v29_v14  }
  0x8c   :  { %v47_v15 = vpop.permute.xlu0 %46  }
  0x8d   :  { %57 = vst.msk [vmem:[%s118_s1 + $0x7] ss:$8 sm:$0xf] %vm7_vm0, %v47_v15  }

// kernel: fused_conv_min.1
= control target key start
LH: loop header
LB: loop body
LE: loop exit
PB: predicated region body
PF: predicated region fallthrough
CT: control target
= control target key end

     0   :  { %s1292_s13 = smov 127   ;;  %s1293_s14 = smov 126   ;;  %vm95_vm0 = vcmask 1031168   ;;  %vm137_vm1 = vcmask 916480   ;;  %vm171_vm2 = vcmask 908288   ;;  %vm251_vm3 = vcmask 785408   ;;  %s1724_s0 = inlined_call_operand.vmem [shape: f32[1,3,640], index: 0, kind: input, shape index: {}]   ;;  %s1725_s1 = inlined_call_operand.vmem [shape: f32[16,32], index: 1, kind: input, shape index: {}]   ;;  %s1726_s2 = inlined_call_operand.vmem [shape: f32[1,1,512], index: 2, kind: output, shape index: {}]  }
   0x1   :  { %v1320_v0 = vld [vmem:[%s1724_s0] sm:$0x77]  ;;  %v1325_v1 = vld [vmem:[%s1724_s0 + $0x8] sm:$0x77]  ;;  %s1294_s15 = smov 112   ;;  %s1295_s18 = smov 111  }
   0x2   :  { %16 = vst [vmem:[#allocation1] ss:$2 sm:$0xff] %v1320_v0  ;;  %v1359_v23 = vld [vmem:[%s1724_s0 + $0x10] sm:$0x7]  ;;  %s1296_s0 = smov 110   ;;  %s1297_s19 = smov 96  }
   0x3   :  { %18 = vst [vmem:[#allocation1 + $0x10] ss:$2 sm:$0xff] %v1325_v1  ;;  %s1298_s20 = smov 95   ;;  %s1299_s21 = smov 94   ;;  %vm209_vm4 = vcmask 900096   ;;  %vm289_vm6 = vcmask 777216  }
   0x4   :  { %36 = vst [vmem:[#allocation1 + $0x20] ss:$2 sm:$0xff] %v1359_v23  ;;  %vm364_vm7 = vcmask 261120   ;;  %vm322_vm8 = vcmask 769024   ;;  %vm57_vm9 = vcmask 1039360   ;;  %vm1270_vm10 = vcmask 1040384  }
   0x5   :  { %vm1272_vm11 = vcmask 1042434   ;;  %vm1274_vm12 = vcmask 1041408  }
   0x9   :  { %v19_v2 = vld.sshfl [vmem:[#allocation1] sm:$0xff pattern:$0x75316420]  ;;  %v20_v3 = vld.sshfl [vmem:[#allocation1 + $0x8] sm:$0xff pattern:$0x75316420] }
   0xa   :  { %32 = vst [vmem:[#allocation1] ss:$2 sm:$0xff] %v1320_v0  ;;  %v21_v4 = vld.sshfl [vmem:[#allocation1 + $0x10] sm:$0xff pattern:$0x75316420] }
   0xb   :  { %27 = vst [vmem:[#allocation2] sm:$0x7] %v19_v2  ;;  %v22_v5 = vld.sshfl [vmem:[#allocation1 + $0x18] sm:$0xff pattern:$0x75316420] }
   0xc   :  { %28 = vst [vmem:[#allocation2 + $0x8] sm:$0x7] %v20_v3  ;;  %v1370_v28 = vld.sshfl [vmem:[#allocation1 + $0x20] sm:$0xff pattern:$0x75316420] }
   0xd   :  { %34 = vst [vmem:[#allocation1 + $0x10] ss:$2 sm:$0xff] %v1325_v1 }
   0xe   :  { %29 = vst [vmem:[#allocation2 + $0x10] sm:$0x7] %v21_v4 }
   0xf   :  { %30 = vst [vmem:[#allocation2 + $0x18] sm:$0x7] %v22_v5 }
  0x10   :  { %74 = vst [vmem:[#allocation1 + $0x20] ss:$2 sm:$0xff] %v1359_v23 }
  0x11   :  { %v37_v6 = vld.sshfl [vmem:[#allocation1] sm:$0xff pattern:$0x75316420]  ;;  %v1331_v7 = vld.sshfl [vmem:[#allocation1 + $0x8] sm:$0xff pattern:$0x75316420] }
  0x12   :  { %70 = vst [vmem:[#allocation1] ss:$2 sm:$0xff] %v1320_v0  ;;  %v42_v8 = vrot.slane %v37_v6, 5  ;;  %v43_v58 = vrot.slane %v1331_v7, 5 }
  0x14   :  { %47 = vrot.lane.b32.xlu2 %v42_v8, %s1292_s13  ;;  %v1335_v9 = vld.sshfl [vmem:[#allocation1 + $0x10] sm:$0xff pattern:$0x75316420]  ;;  %v1337_v10 = vld.sshfl [vmem:[#allocation1 + $0x18] sm:$0xff pattern:$0x75316420] }
  0x15   :  { %72 = vst [vmem:[#allocation1 + $0x10] ss:$2 sm:$0xff] %v1325_v1  ;;  %v44_v59 = vrot.slane %v1335_v9, 5  ;;  %v45_v4 = vrot.slane %v1337_v10, 5 }
  0x17   :  { %v1376_v34 = vld.sshfl [vmem:[#allocation1 + $0x20] sm:$0xff pattern:$0x75316420] }
  0x18   :  { %116 = vst [vmem:[#allocation1 + $0x20] ss:$2 sm:$0xff] %v1359_v23 }
  0x19   :  { %v75_v11 = vld.sshfl [vmem:[#allocation1] sm:$0xff pattern:$0x75316420]  ;;  %v76_v12 = vld.sshfl [vmem:[#allocation1 + $0x8] sm:$0xff pattern:$0x75316420] }
  0x1a   :  { %112 = vst [vmem:[#allocation1] ss:$2 sm:$0xff] %v1320_v0  ;;  %v80_v13 = vrot.slane %v75_v11, 2  ;;  %v81_v14 = vrot.slane %v76_v12, 2 }
  0x1c   :  { %85 = vrot.lane.b32.xlu2 %v80_v13, %s1293_s14  ;;  %87 = vrot.lane.b32.xlu0 %v81_v14, %s1293_s14  ;;  %v1343_v15 = vld.sshfl [vmem:[#allocation1 + $0x10] sm:$0xff pattern:$0x75316420]  ;;  %v1345_v16 = vld.sshfl [vmem:[#allocation1 + $0x18] sm:$0xff pattern:$0x75316420] }
  0x1d   :  { %114 = vst [vmem:[#allocation1 + $0x10] ss:$2 sm:$0xff] %v1325_v1  ;;  %v82_v54 = vrot.slane %v1343_v15, 2 }
  0x1f   :  { %v1383_v41 = vld.sshfl [vmem:[#allocation1 + $0x20] sm:$0xff pattern:$0x75316420] }
  0x20   :  { %155 = vst [vmem:[#allocation1 + $0x21] ss:$2 sm:$0xff] %v1359_v23  ;;  %v126_v10 = vrot.slane %v1383_v41, 7 }
  0x21   :  { %v117_v17 = vld.sshfl [vmem:[#allocation1] sm:$0xff pattern:$0x75316420]  ;;  %v118_v18 = vld.sshfl [vmem:[#allocation1 + $0x8] sm:$0xff pattern:$0x75316420] }
  0x22   :  { %v122_v19 = vrot.slane %v117_v17, 7  ;;  %151 = vst [vmem:[#allocation1 + $0x1] ss:$2 sm:$0xff] %v1320_v0  ;;  %v123_v20 = vrot.slane %v118_v18, 7 }
  0x24   :  { %127 = vrot.lane.b32.xlu1 %v122_v19, %s1294_s15  ;;  %129 = vrot.lane.b32.xlu2 %v123_v20, %s1294_s15  ;;  %v1351_v21 = vld.sshfl [vmem:[#allocation1 + $0x10] sm:$0xff pattern:$0x75316420]  ;;  %v1353_v22 = vld.sshfl [vmem:[#allocation1 + $0x18] sm:$0xff pattern:$0x75316420] }
  0x25   :  { %153 = vst [vmem:[#allocation1 + $0x11] ss:$2 sm:$0xff] %v1325_v1  ;;  %v125_v2 = vrot.slane %v1353_v22, 7  ;;  %v46_v20 = vrot.slane %v1370_v28, 5  ;;  %v335_v28 = vlaneseq }
  0x27   :  { %v160_v49 = vld.sshfl [vmem:[#allocation1 + $0x20] sm:$0xff pattern:$0x75316420]  ;;  %vm1451_vm5 = vcmp.lt.s32.totalorder %v335_v28, 512 }
  0x28   :  { %188 = vst [vmem:[#allocation1 + $0x20] ss:$2 sm:$0xff] %v1359_v23 }
  0x29   :  { %v156_v24 = vld.sshfl [vmem:[#allocation1] sm:$0xff pattern:$0x75316420]  ;;  %v157_v25 = vld.sshfl [vmem:[#allocation1 + $0x8] sm:$0xff pattern:$0x75316420] }
  0x2a   :  { %184 = vst [vmem:[#allocation1] ss:$2 sm:$0xff] %v1320_v0  ;;  %161 = vrot.lane.b32.xlu0 %v156_v24, %s1295_s18 }
  0x2c   :  { %163 = vrot.lane.b32.xlu1 %v157_v25, %s1295_s18  ;;  %v1365_v26 = vld.sshfl [vmem:[#allocation1 + $0x10] sm:$0xff pattern:$0x75316420]  ;;  %v1367_v27 = vld.sshfl [vmem:[#allocation1 + $0x18] sm:$0xff pattern:$0x75316420] }
  0x2d   :  { %186 = vst [vmem:[#allocation1 + $0x10] ss:$2 sm:$0xff] %v1325_v1 }
  0x2f   :  { %v193_v53 = vld.sshfl [vmem:[#allocation1 + $0x20] sm:$0xff pattern:$0x75316420] }
  0x30   :  { %230 = vst [vmem:[#allocation1 + $0x20] ss:$2 sm:$0xff] %v1359_v23  ;;  %v198_v12 = vrot.slane %v193_v53, 1 }
  0x31   :  { %v189_v29 = vld.sshfl [vmem:[#allocation1] sm:$0xff pattern:$0x75316420]  ;;  %v190_v30 = vld.sshfl [vmem:[#allocation1 + $0x8] sm:$0xff pattern:$0x75316420] }
  0x32   :  { %v194_v31 = vrot.slane %v189_v29, 1  ;;  %226 = vst [vmem:[#allocation1] ss:$2 sm:$0xff] %v1320_v0  ;;  %v195_v35 = vrot.slane %v190_v30, 1  ;;  %v1300_v30 = vmov 1.0  }
  0x33   :  { %340 = vst.msk [vmem:[#allocation2 + $0x63] ss:$8 sm:$0xf] %vm1451_vm5, %v1300_v30 }
  0x34   :  { %199 = vrot.lane.b32.xlu1 %v194_v31, %s1296_s0  ;;  %v191_v32 = vld.sshfl [vmem:[#allocation1 + $0x10] sm:$0xff pattern:$0x75316420]  ;;  %v192_v33 = vld.sshfl [vmem:[#allocation1 + $0x18] sm:$0xff pattern:$0x75316420] }
  0x35   :  { %228 = vst [vmem:[#allocation1 + $0x10] ss:$2 sm:$0xff] %v1325_v1  ;;  %v196_v52 = vrot.slane %v191_v32, 1  ;;  %v197_v62 = vrot.slane %v192_v33, 1  ;;  %v1301_v32 = vmov 0.0  }
  0x36   :  { %342 = vst [vmem:[#allocation2 + $0x60] sm:$0xf0] %v1301_v32 }
  0x37   :  { %v235_v57 = vld.sshfl [vmem:[#allocation1 + $0x20] sm:$0xff pattern:$0x75316420]  ;;  %343 = vst [vmem:[#allocation2 + $0x68] sm:$0xf0] %v1301_v32 }
  0x38   :  { %268 = vst [vmem:[#allocation1 + $0x20] ss:$2 sm:$0xff] %v1359_v23  ;;  %v240_v6 = vrot.slane %v235_v57, 6 }
  0x39   :  { %v231_v36 = vld.sshfl [vmem:[#allocation1] sm:$0xff pattern:$0x75316420]  ;;  %v232_v37 = vld.sshfl [vmem:[#allocation1 + $0x8] sm:$0xff pattern:$0x75316420] }
  0x3a   :  { %v236_v38 = vrot.slane %v231_v36, 6  ;;  %264 = vst [vmem:[#allocation1] ss:$2 sm:$0xff] %v1320_v0  ;;  %v237_v42 = vrot.slane %v232_v37, 6 }
  0x3b   :  { %344 = vst [vmem:[#allocation2 + $0x70] sm:$0xf0] %v1301_v32 }
  0x3c   :  { %201 = vrot.lane.b32.xlu1 %v195_v35, %s1296_s0  ;;  %241 = vrot.lane.b32.xlu2 %v236_v38, %s1297_s19  ;;  %v233_v39 = vld.sshfl [vmem:[#allocation1 + $0x10] sm:$0xff pattern:$0x75316420]  ;;  %v234_v40 = vld.sshfl [vmem:[#allocation1 + $0x18] sm:$0xff pattern:$0x75316420] }
  0x3d   :  { %266 = vst [vmem:[#allocation1 + $0x10] ss:$2 sm:$0xff] %v1325_v1  ;;  %v238_v61 = vrot.slane %v233_v39, 6  ;;  %v239_v63 = vrot.slane %v234_v40, 6 }
  0x3e   :  { %345 = vst [vmem:[#allocation2 + $0x78] sm:$0xf0] %v1301_v32 }
  0x3f   :  { %v273_v60 = vld.sshfl [vmem:[#allocation1 + $0x20] sm:$0xff pattern:$0x75316420] }
  0x40   :  { %306 = vst [vmem:[#allocation1 + $0x20] ss:$2 sm:$0xff] %v1359_v23  ;;  %v278_v9 = vrot.slane %v273_v60, 3 }
  0x41   :  { %v269_v43 = vld.sshfl [vmem:[#allocation1] sm:$0xff pattern:$0x75316420]  ;;  %v270_v44 = vld.sshfl [vmem:[#allocation1 + $0x8] sm:$0xff pattern:$0x75316420] }
  0x42   :  { %v274_v45 = vrot.slane %v269_v43, 3  ;;  %v275_v46 = vrot.slane %v270_v44, 3  ;;  %302 = vst [vmem:[#allocation1] ss:$2 sm:$0xff] %v1320_v0  ;;  %v124_v0 = vrot.slane %v1351_v21, 7  ;;  %v346_v44 = vld [vmem:[%s1725_s1] sm:$0xff] }
  0x44   :  { %279 = vrot.lane.b32.xlu0 %v274_v45, %s1298_s20  ;;  %281 = vrot.lane.b32.xlu1 %v275_v46, %s1298_s20  ;;  %v271_v47 = vld.sshfl [vmem:[#allocation1 + $0x10] sm:$0xff pattern:$0x75316420]  ;;  %v272_v48 = vld.sshfl [vmem:[#allocation1 + $0x18] sm:$0xff pattern:$0x75316420] }
  0x45   :  { %243 = vrot.lane.b32.xlu2 %v237_v42, %s1297_s19  ;;  %304 = vst [vmem:[#allocation1 + $0x10] ss:$2 sm:$0xff] %v1325_v1  ;;  %v276_v50 = vrot.slane %v271_v47, 3  ;;  %v83_v1 = vrot.slane %v1345_v16, 2  ;;  %v277_v3 = vrot.slane %v272_v48, 3  ;;  %v84_v16 = vrot.slane %v1376_v34, 2 }
  0x46   :  { %v366_v46 = vsel %vm364_vm7, %v346_v44, 0 }
  0x47   :  { %v311_v5 = vld.sshfl [vmem:[#allocation1 + $0x20] sm:$0xff pattern:$0x75316420] }
  0x49   :  { %v307_v51 = vld.sshfl [vmem:[#allocation1] sm:$0xff pattern:$0x75316420]  ;;  %v308_v55 = vld.sshfl [vmem:[#allocation1 + $0x8] sm:$0xff pattern:$0x75316420] }
  0x4c   :  { %312 = vrot.lane.b32.xlu0 %v307_v51, %s1299_s21  ;;  %283 = vrot.lane.b32.xlu1 %v276_v50, %s1298_s20  ;;  %v309_v56 = vld.sshfl [vmem:[#allocation1 + $0x10] sm:$0xff pattern:$0x75316420]  ;;  %v310_v8 = vld.sshfl [vmem:[#allocation1 + $0x18] sm:$0xff pattern:$0x75316420] }
  0x4d   :  { %203 = vrot.lane.b32.xlu2 %v196_v52, %s1296_s0  ;;  %v1482_v52 = vand.u32 4294901760, %v366_v46 }
  0x54   :  { %314 = vrot.lane.b32.xlu0 %v308_v55, %s1299_s21  ;;  %316 = vrot.lane.b32.xlu1 %v309_v56, %s1299_s21  ;;  %v347_v55 = vld [vmem:[%s1725_s1 + $0x8] sm:$0xff]  ;;  %v1490_v56 = vsub.f32 %v366_v46, %v1482_v52 }
  0x55   :  { %89 = vrot.lane.b32.xlu2 %v82_v54, %s1293_s14 }
  0x5c   :  { %49 = vrot.lane.b32.xlu0 %v43_v58, %s1292_s13  ;;  %165 = vrot.lane.b32.xlu1 %v1365_v26, %s1295_s18  ;;  %v369_v58 = vsel %vm364_vm7, %v347_v55, 0 }
  0x5d   :  { %51 = vrot.lane.b32.xlu2 %v44_v59, %s1292_s13 }
  0x64   :  { %245 = vrot.lane.b32.xlu0 %v238_v61, %s1297_s19  ;;  %205 = vrot.lane.b32.xlu1 %v197_v62, %s1296_s0 }
  0x65   :  { %247 = vrot.lane.b32.xlu2 %v239_v63, %s1297_s19 }
  0x6c   :  { %131 = vrot.lane.b32.xlu0 %v124_v0, %s1294_s15  ;;  %91 = vrot.lane.b32.xlu1 %v83_v1, %s1293_s14 }
  0x6d   :  { %133 = vrot.lane.b32.xlu2 %v125_v2, %s1294_s15 }
  0x6e   :  { %v1421_v7 = vpop.permute.xlu2 %47 }
  0x74   :  { %285 = vrot.lane.b32.xlu0 %v277_v3, %s1298_s20  ;;  %53 = vrot.lane.b32.xlu1 %v45_v4, %s1292_s13 }
  0x75   :  { %320 = vrot.lane.b32.xlu2 %v311_v5, %s1299_s21  ;;  %v1512_v5 = vand.u32 4294901760, %v1490_v56 }
  0x76   :  { %v86_v11 = vpop.permute.xlu2 %85 }
  0x7c   :  { %318 = vrot.lane.b32.xlu0 %v310_v8, %s1299_s21  ;;  %249 = vrot.lane.b32.xlu1 %v240_v6, %s1297_s19  ;;  %v1514_v6 = vand.u32 4294901760, %v369_v58 }
  0x7d   :  { %287 = vrot.lane.b32.xlu2 %v278_v9, %s1298_s20 }
  0x7e   :  { %v1432_v13 = vpop.permute.xlu2 %129 }
  0x84   :  { %167 = vrot.lane.b32.xlu0 %v1367_v27, %s1295_s18  ;;  %135 = vrot.lane.b32.xlu1 %v126_v10, %s1294_s15 }
  0x85   :  { %169 = vrot.lane.b32.xlu2 %v160_v49, %s1295_s18 }
  0x8c   :  { %207 = vrot.lane.b32.xlu0 %v198_v12, %s1296_s0 }
  0x8e   :  { %v88_v14 = vpop.permute.xlu0 %87 }
  0x8f   :  { %v96_v15 = vsel %vm95_vm0, %v86_v11, %v88_v14 }
  0x90   :  { %104 = vst [vmem:[#allocation2] sm:$0xc0] %v96_v15 }
  0x91   :  { %108 = vst [vmem:[#allocation2 + $0x20] sm:$0x1] %v96_v15  ;;  %v1532_v15 = vsub.f32 %v369_v58, %v1514_v6 }
  0x93   :  { %v1559_v32 = vand.u32 4294901760, %v1532_v15 }
  0x94   :  { %93 = vrot.lane.b32.xlu0 %v84_v16, %s1293_s14 }
  0x96   :  { %v128_v17 = vpop.permute.xlu1 %127  ;;  %v242_v18 = vpop.permute.xlu2 %241 }
  0x97   :  { %v138_v19 = vsel %vm137_vm1, %v128_v17, %v1432_v13 }
  0x98   :  { %146 = vst [vmem:[#allocation2 + $0x20] sm:$0xe] %v138_v19 }
  0x9c   :  { %55 = vrot.lane.b32.xlu0 %v46_v20, %s1292_s13  ;;  %v162_v21 = vpop.permute.xlu0 %161 }
  0x9e   :  { %v1441_v22 = vpop.permute.xlu1 %163 }
  0x9f   :  { %v1443_v23 = vpop.permute.xlu2 %243  ;;  %v172_v24 = vsel %vm171_vm2, %v162_v21, %v1441_v22 }
  0xa0   :  { %v252_v25 = vsel %vm251_vm3, %v242_v18, %v1443_v23  ;;  %180 = vst [vmem:[#allocation2 + $0x20] sm:$0x70] %v172_v24 }
  0xa1   :  { %260 = vst [vmem:[#allocation2 + $0x40] sm:$0x1c] %v252_v25 }
  0xa6   :  { %v200_v26 = vpop.permute.xlu1 %199 }
  0xa7   :  { %v1449_v27 = vpop.permute.xlu2 %203 }
  0xae   :  { %v202_v31 = vpop.permute.xlu1 %201 }
  0xaf   :  { %v210_v33 = vsel %vm209_vm4, %v200_v26, %v202_v31  ;;  %v211_v34 = vsel %vm209_vm4, %v202_v31, %v1449_v27  ;;  %v1460_v35 = vpop.permute.xlu2 %89 }
  0xb0   :  { %218 = vst [vmem:[#allocation2 + $0x20] sm:$0x80] %v210_v33  ;;  %v97_v36 = vsel %vm95_vm0, %v88_v14, %v1460_v35  ;;  %v394_v14 = vsub.f32 %v1490_v56, %v1512_v5 }
  0xb1   :  { %219 = vst [vmem:[#allocation2 + $0x28] sm:$0x80] %v211_v34 }
  0xb2   :  { %222 = vst [vmem:[#allocation2 + $0x40] sm:$0x3] %v210_v33 }
  0xb3   :  { %223 = vst [vmem:[#allocation2 + $0x48] sm:$0x3] %v211_v34 }
  0xb4   :  { %105 = vst [vmem:[#allocation2 + $0x8] sm:$0xc0] %v97_v36 }
  0xb5   :  { %109 = vst [vmem:[#allocation2 + $0x28] sm:$0x1] %v97_v36 }
  0xb6   :  { %v280_v37 = vpop.permute.xlu0 %279  ;;  %v282_v38 = vpop.permute.xlu1 %281 }
  0xb7   :  { %v290_v39 = vsel %vm289_vm6, %v280_v37, %v282_v38  ;;  %v1465_v40 = vpop.permute.xlu2 %51  ;;  %v352_v54 = vld [vmem:[#allocation2 + $0x20] sm:$0xff] }
  0xb8   :  { %298 = vst [vmem:[#allocation2 + $0x40] sm:$0xe0] %v290_v39  ;;  %v1492_v57 = vand.u32 4294901760, %v352_v54  ;;  %v402_v39 = vsub.f32 %v1532_v15, %v1559_v32 }
  0xbe   :  { %v313_v41 = vpop.permute.xlu0 %312  ;;  %v1467_v42 = vpop.permute.xlu1 %283 }
  0xbf   :  { %v291_v43 = vsel %vm289_vm6, %v282_v38, %v1467_v42  ;;  %v1474_v45 = vpop.permute.xlu2 %247  ;;  %v356_v51 = vld [vmem:[#allocation2 + $0x40] sm:$0xff] }
  0xc0   :  { %299 = vst [vmem:[#allocation2 + $0x48] sm:$0xe0] %v291_v43  ;;  %v1484_v53 = vand.u32 4294901760, %v356_v51 }
  0xc2   :  { %v1498_v61 = vsub.f32 %v356_v51, %v1484_v53 }
  0xc4   :  { %v428_v10 = vand.u32 4294901760, %v1498_v61 }
  0xc6   :  { %v315_v47 = vpop.permute.xlu0 %314  ;;  %v1477_v48 = vpop.permute.xlu1 %316  ;;  %v429_v21 = vsub.f32 %v1498_v61, %v428_v10 }
  0xc7   :  { %v323_v49 = vsel %vm322_vm8, %v313_v41, %v315_v47  ;;  %v324_v50 = vsel %vm322_vm8, %v315_v47, %v1477_v48  ;;  %v1509_v3 = vpop.permute.xlu2 %133 }
  0xc8   :  { %331 = vst [vmem:[#allocation2 + $0x60] sm:$0x7] %v323_v49  ;;  %v430_v37 = vand.u32 4294901760, %v429_v21 }
  0xc9   :  { %332 = vst [vmem:[#allocation2 + $0x68] sm:$0x7] %v324_v50 }
  0xce   :  { %v50_v59 = vpop.permute.xlu0 %49  ;;  %v1495_v60 = vpop.permute.xlu1 %165 }
  0xcf   :  { %v58_v62 = vsel %vm57_vm9, %v1421_v7, %v50_v59  ;;  %v59_v63 = vsel %vm57_vm9, %v50_v59, %v1465_v40  ;;  %v173_v0 = vsel %vm171_vm2, %v1441_v22, %v1495_v60  ;;  %v360_v1 = vld [vmem:[#allocation2 + $0x60] sm:$0xff]  ;;  %v1517_v7 = vsub.f32 %v352_v54, %v1492_v57  ;;  %v1564_v36 = vpop.permute.xlu2 %320 }
  0xd0   :  { %66 = vst [vmem:[#allocation2] sm:$0x38] %v58_v62  ;;  %v1507_v2 = vand.u32 4294901760, %v360_v1  ;;  %v361_v4 = vld [vmem:[#allocation2 + $0x68] sm:$0xff]  ;;  %v1583_v59 = vand.u32 4294901760, %v402_v39 }
  0xd1   :  { %67 = vst [vmem:[#allocation2 + $0x8] sm:$0x38] %v59_v63  ;;  %v1519_v8 = vand.u32 4294901760, %v361_v4  ;;  %v434_v17 = vand.u32 4294901760, %v1517_v7 }
  0xd2   :  { %181 = vst [vmem:[#allocation2 + $0x28] sm:$0x70] %v173_v0  ;;  %384 = vmatpush.msra.mxu0 %v1507_v2  ;;  %501 = vmatpush.msra.mxu3 %v1507_v2  ;;  %v421_v9 = vsub.f32 %v360_v1, %v1507_v2 }
  0xd3   :  { %v1526_v11 = vsub.f32 %v361_v4, %v1519_v8  ;;  %v435_v33 = vsub.f32 %v1517_v7, %v434_v17 }
  0xd4   :  { %386 = vmatpush.msra.mxu0 %v1484_v53  ;;  %467 = vmatpush.msra.mxu2 %v421_v9  ;;  %v422_v12 = vand.u32 4294901760, %v421_v9 }
  0xd5   :  { %503 = vmatpush.msra.mxu3 %v1484_v53  ;;  %v638_v16 = vand.u32 4294901760, %v1526_v11  ;;  %v436_v41 = vand.u32 4294901760, %v435_v33 }
  0xd6   :  { %v246_v18 = vpop.permute.xlu0 %245  ;;  %v1537_v19 = vpop.permute.xlu1 %205  ;;  %388 = vmatpush.msra.mxu0 %v1492_v57  ;;  %470 = vmatpush.msra.mxu2 %v1498_v61  ;;  %v423_v20 = vsub.f32 %v421_v9, %v422_v12 }
  0xd7   :  { %v253_v22 = vsel %vm251_vm3, %v1443_v23, %v246_v18  ;;  %v254_v24 = vsel %vm251_vm3, %v246_v18, %v1474_v45  ;;  %v212_v25 = vsel %vm209_vm4, %v1449_v27, %v1537_v19  ;;  %505 = vmatpush.msra.mxu3 %v1492_v57  ;;  %v348_v26 = vld [vmem:[#allocation2] sm:$0xff]  ;;  %v639_v28 = vsub.f32 %v1526_v11, %v638_v16  ;;  %v288_v61 = vpop.permute.xlu2 %287 }
  0xd8   :  { %261 = vst [vmem:[#allocation2 + $0x48] sm:$0x1c] %v253_v22  ;;  %473 = vmatpush.msra.mxu2 %v1517_v7  ;;  %v424_v30 = vand.u32 4294901760, %v423_v20  ;;  %v1554_v31 = vand.u32 4294901760, %v348_v26  ;;  %v1556_v23 = vand.u32 4294901760, %v394_v14  ;;  %v349_v54 = vld [vmem:[#allocation2 + $0x8] sm:$0xff] }
  0xd9   :  { %262 = vst [vmem:[#allocation2 + $0x50] sm:$0x1c] %v254_v24  ;;  %v640_v27 = vand.u32 4294901760, %v639_v28 }
  0xda   :  { %220 = vst [vmem:[#allocation2 + $0x30] sm:$0x80] %v212_v25  ;;  %425 = vmatpush.msra.mxu1 %v424_v30  ;;  %390 = vmatpush.msra.mxu0 %v1554_v31  ;;  %v439_v34 = vsub.f32 %v348_v26, %v1554_v31 }
  0xdb   :  { %224 = vst [vmem:[#allocation2 + $0x50] sm:$0x3] %v212_v25  ;;  %507 = vmatpush.msra.mxu3 %v1554_v31  ;;  %396 = vmatmul.f32.vlgmr.msra.gmra.mxu0 %v1556_v23 }
  0xdc   :  { %536 = vmatpush.msrb.mxu0 %v422_v12  ;;  %v440_v38 = vand.u32 4294901760, %v439_v34  ;;  %431 = vmatpush.msra.mxu1 %v430_v37 }
  0xdd   :  { %641 = vmatpush.msrb.mxu3 %v640_v27  ;;  %476 = vmatpush.msra.mxu2 %v439_v34 }
  0xde   :  { %540 = vmatpush.msrb.mxu0 %v428_v10  ;;  %v132_v43 = vpop.permute.xlu0 %131  ;;  %v1571_v44 = vpop.permute.xlu1 %91  ;;  %v441_v46 = vsub.f32 %v439_v34, %v440_v38  ;;  %437 = vmatpush.msra.mxu1 %v436_v41 }
  0xdf   :  { %600 = vmatpush.msrb.mxu2 %v1519_v8  ;;  %v139_v47 = vsel %vm137_vm1, %v1432_v13, %v132_v43  ;;  %v140_v49 = vsel %vm137_vm1, %v132_v43, %v1509_v3  ;;  %v98_v50 = vsel %vm95_vm0, %v1460_v35, %v1571_v44  ;;  %v357_v51 = vld [vmem:[#allocation2 + $0x48] sm:$0xff]  ;;  %511 = vmatmul.f32.vlgmr.msra.gmra.mxu3 %v1512_v5  ;;  %v1587_v35 = vand.u32 4294901760, %v349_v54 }
  0xe0   :  { %479 = vmatmul.f32.vlgmr.msra.gmra.mxu2 %v1490_v56  ;;  %147 = vst [vmem:[#allocation2 + $0x28] sm:$0xe] %v139_v47  ;;  %544 = vmatpush.msrb.mxu0 %v434_v17  ;;  %v442_v55 = vand.u32 4294901760, %v441_v46  ;;  %v1581_v58 = vand.u32 4294901760, %v357_v51 }
  0xe1   :  { %148 = vst [vmem:[#allocation2 + $0x30] sm:$0xe] %v140_v49  ;;  %v655_v4 = vsub.f32 %v349_v54, %v1587_v35 }
  0xe2   :  { %106 = vst [vmem:[#allocation2 + $0x10] sm:$0xc0] %v98_v50  ;;  %548 = vmatpush.msrb.mxu0 %v440_v38  ;;  %443 = vmatpush.msra.mxu1 %v442_v55  ;;  %v643_v13 = vsub.f32 %v357_v51, %v1581_v58 }
  0xe3   :  { %110 = vst [vmem:[#allocation2 + $0x30] sm:$0x1] %v98_v50  ;;  %602 = vmatpush.msrb.mxu2 %v1581_v58  ;;  %445 = vmatmul.f32.vlgmr.msra.gmra.mxu1 %v1482_v52 }
  0xe4   :  { %683 = vmatpush.msra.mxu0 %v1526_v11  ;;  %v644_v62 = vand.u32 4294901760, %v643_v13  ;;  %571 = vmatpush.msrb.mxu1 %v1507_v2 }
  0xe5   :  { %404 = vmatmul.f32.gmra.mxu0 %v1583_v59 }
  0xe6   :  { %686 = vmatpush.msra.mxu0 %v643_v13  ;;  %v286_v63 = vpop.permute.xlu0 %285  ;;  %v1594_v0 = vpop.permute.xlu1 %53  ;;  %v645_v1 = vsub.f32 %v643_v13, %v644_v62  ;;  %573 = vmatpush.msrb.mxu1 %v1484_v53 }
  0xe7   :  { %v292_v7 = vsel %vm289_vm6, %v1467_v42, %v286_v63  ;;  %v60_v9 = vsel %vm57_vm9, %v1465_v40, %v1594_v0  ;;  %v293_v2 = vsel %vm289_vm6, %v286_v63, %v288_v61  ;;  %v353_v10 = vld [vmem:[#allocation2 + $0x28] sm:$0xff]  ;;  %517 = vmatmul.f32.gmra.mxu3 %v1559_v32  ;;  %v656_v42 = vand.u32 4294901760, %v655_v4 }
  0xe8   :  { %484 = vmatmul.f32.gmra.mxu2 %v1532_v15  ;;  %300 = vst [vmem:[#allocation2 + $0x50] sm:$0xe0] %v292_v7  ;;  %v1605_v12 = vand.u32 4294901760, %v353_v10  ;;  %v646_v14 = vand.u32 4294901760, %v645_v1  ;;  %575 = vmatpush.msrb.mxu1 %v1492_v57 }
  0xe9   :  { %68 = vst [vmem:[#allocation2 + $0x10] sm:$0x38] %v60_v9  ;;  %v657_v24 = vsub.f32 %v655_v4, %v656_v42 }
  0xea   :  { %301 = vst [vmem:[#allocation2 + $0x58] sm:$0xe0] %v293_v2  ;;  %604 = vmatpush.msrb.mxu2 %v1605_v12  ;;  %647 = vmatpush.msrb.mxu3 %v646_v14  ;;  %v649_v40 = vsub.f32 %v353_v10, %v1605_v12 }
  0xeb   :  { %577 = vmatpush.msrb.mxu1 %v1554_v31  ;;  %v658_v11 = vand.u32 4294901760, %v657_v24 }
  0xec   :  { %v650_v53 = vand.u32 4294901760, %v649_v40  ;;  %449 = vmatmul.f32.gmra.mxu1 %v1514_v6  ;;  %606 = vmatpush.msrb.mxu2 %v1587_v35 }
  0xed   :  { %717 = vmatpush.msra.mxu1 %v1519_v8  ;;  %550 = vmatmul.f32.vlgmr.msrb.gmra.mxu0 %v1482_v52 }
  0xee   :  { %689 = vmatpush.msra.mxu0 %v649_v40  ;;  %v319_v57 = vpop.permute.xlu0 %318  ;;  %v250_v17 = vpop.permute.xlu1 %249  ;;  %v651_v18 = vsub.f32 %v649_v40, %v650_v53  ;;  %752 = vmatpush.msra.mxu2 %v638_v16 }
  0xef   :  { %719 = vmatpush.msra.mxu1 %v1581_v58  ;;  %v325_v20 = vsel %vm322_vm8, %v1477_v48, %v319_v57  ;;  %v326_v21 = vsel %vm322_vm8, %v319_v57, %v1564_v36  ;;  %v255_v22 = vsel %vm251_vm3, %v1474_v45, %v250_v17  ;;  %v358_v25 = vld [vmem:[#allocation2 + $0x50] sm:$0xff]  ;;  %v170_v45 = vpop.permute.xlu2 %169 }
  0xf0   :  { %333 = vst [vmem:[#allocation2 + $0x70] sm:$0x7] %v325_v20  ;;  %692 = vmatpush.msra.mxu0 %v655_v4  ;;  %v652_v26 = vand.u32 4294901760, %v651_v18  ;;  %612 = vmatmul.f32.vlgmr.msrb.gmra.mxu2 %v1556_v23  ;;  %v1628_v48 = vand.u32 4294901760, %v358_v25  ;;  %v350_v38 = vld [vmem:[#allocation2 + $0x10] sm:$0xff] }
  0xf1   :  { %721 = vmatpush.msra.mxu1 %v1605_v12  ;;  %334 = vst [vmem:[#allocation2 + $0x78] sm:$0x7] %v326_v21  ;;  %756 = vmatpush.msra.mxu2 %v644_v62  ;;  %v1656_v43 = vand.u32 4294901760, %v350_v38 }
  0xf2   :  { %263 = vst [vmem:[#allocation2 + $0x58] sm:$0x1c] %v255_v22  ;;  %653 = vmatpush.msrb.mxu3 %v652_v26  ;;  %v1634_v30 = vsub.f32 %v358_v25, %v1628_v48 }
  0xf3   :  { %723 = vmatpush.msra.mxu1 %v1587_v35  ;;  %760 = vmatpush.msra.mxu2 %v650_v53  ;;  %v871_v13 = vsub.f32 %v350_v38, %v1656_v43 }
  0xf4   :  { %579 = vmatmul.f32.vlgmr.msrb.gmra.mxu1 %v1482_v52  ;;  %659 = vmatpush.msrb.mxu3 %v658_v11 }
  0xf5   :  { %554 = vmatmul.f32.gmra.mxu0 %v1514_v6  ;;  %764 = vmatpush.msra.mxu2 %v656_v42  ;;  %v872_v63 = vand.u32 4294901760, %v871_v13 }
  0xf6   :  { %661 = vmatmul.f32.vlgmr.msrb.gmra.mxu3 %v1482_v52  ;;  %v168_v16 = vpop.permute.xlu0 %167  ;;  %v136_v28 = vpop.permute.xlu1 %135 }
  0xf7   :  { %787 = vmatpush.msra.mxu3 %v1519_v8  ;;  %v174_v31 = vsel %vm171_vm2, %v1495_v60, %v168_v16  ;;  %v141_v27 = vsel %vm137_vm1, %v1509_v3, %v136_v28  ;;  %v175_v33 = vsel %vm171_vm2, %v168_v16, %v170_v45  ;;  %v362_v34 = vld [vmem:[#allocation2 + $0x70] sm:$0xff]  ;;  %v860_v3 = vand.u32 4294901760, %v1634_v30 }
  0xf8   :  { %182 = vst [vmem:[#allocation2 + $0x30] sm:$0x70] %v174_v31  ;;  %v1642_v36 = vand.u32 4294901760, %v362_v34  ;;  %v363_v37 = vld [vmem:[#allocation2 + $0x78] sm:$0xff]  ;;  %620 = vmatmul.f32.gmra.mxu2 %v1583_v59 }
  0xf9   :  { %149 = vst [vmem:[#allocation2 + $0x38] sm:$0xe] %v141_v27  ;;  %789 = vmatpush.msra.mxu3 %v1581_v58  ;;  %v1646_v8 = vand.u32 4294901760, %v363_v37  ;;  %v861_v49 = vsub.f32 %v1634_v30, %v860_v3 }
  0xfa   :  { %183 = vst [vmem:[#allocation2 + $0x38] sm:$0x70] %v175_v33  ;;  %816 = vmatpush.msrb.mxu0 %v1642_v36  ;;  %v853_v60 = vsub.f32 %v362_v34, %v1642_v36 }
  0xfb   :  { %791 = vmatpush.msra.mxu3 %v1605_v12  ;;  %v1653_v39 = vsub.f32 %v363_v37, %v1646_v8  ;;  %v873_v12 = vsub.f32 %v871_v13, %v872_v63 }
  0xfc   :  { %899 = vmatpush.msrb.mxu2 %v853_v60  ;;  %v854_v41 = vand.u32 4294901760, %v853_v60  ;;  %583 = vmatmul.f32.gmra.mxu1 %v1514_v6 }
  0xfd   :  { %695 = vmatmul.f32.vlgmr.msra.gmra.mxu0 %v1490_v56  ;;  %793 = vmatpush.msra.mxu3 %v1587_v35  ;;  %v1070_v50 = vand.u32 4294901760, %v1653_v39  ;;  %v862_v35 = vand.u32 4294901760, %v861_v49 }
  0xfe   :  { %818 = vmatpush.msrb.mxu0 %v1628_v48  ;;  %v208_v46 = vpop.permute.xlu0 %207  ;;  %v855_v47 = vsub.f32 %v853_v60, %v854_v41  ;;  %665 = vmatmul.f32.gmra.mxu3 %v1514_v6 }
  0xff   :  { %933 = vmatpush.msrb.mxu3 %v1642_v36  ;;  %v213_v51 = vsel %vm209_vm4, %v1537_v19, %v208_v46  ;;  %902 = vmatpush.msrb.mxu2 %v1634_v30  ;;  %v354_v54 = vld [vmem:[#allocation2 + $0x30] sm:$0xff]  ;;  %v1071_v19 = vsub.f32 %v1653_v39, %v1070_v50 }
 0x100   :  { %221 = vst [vmem:[#allocation2 + $0x38] sm:$0x80] %v213_v51  ;;  %v819_v55 = vand.u32 4294901760, %v354_v54  ;;  %v856_v58 = vand.u32 4294901760, %v855_v47  ;;  %766 = vmatmul.f32.vlgmr.msra.gmra.mxu2 %v1482_v52 }
 0x101   :  { %935 = vmatpush.msrb.mxu3 %v1628_v48  ;;  %225 = vst [vmem:[#allocation2 + $0x58] sm:$0x3] %v213_v51  ;;  %v1072_v1 = vand.u32 4294901760, %v1071_v19 }
 0x102   :  { %820 = vmatpush.msrb.mxu0 %v819_v55  ;;  %857 = vmatpush.msrb.mxu1 %v856_v58  ;;  %v865_v61 = vsub.f32 %v354_v54, %v819_v55 }
 0x103   :  { %937 = vmatpush.msrb.mxu3 %v819_v55 }
 0x104   :  { %863 = vmatpush.msrb.mxu1 %v862_v35  ;;  %v866_v62 = vand.u32 4294901760, %v865_v61  ;;  %822 = vmatpush.msrb.mxu0 %v1656_v43 }
 0x105   :  { %700 = vmatmul.f32.gmra.mxu0 %v1532_v15  ;;  %727 = vmatmul.f32.vlgmr.msra.gmra.mxu1 %v1512_v5 }
 0x106   :  { %905 = vmatpush.msrb.mxu2 %v865_v61  ;;  %939 = vmatpush.msrb.mxu3 %v1656_v43  ;;  %v94_v4 = vpop.permute.xlu0 %93  ;;  %v867_v7 = vsub.f32 %v865_v61, %v866_v62 }
 0x107   :  { %795 = vmatmul.f32.vlgmr.msra.gmra.mxu3 %v1482_v52  ;;  %968 = vmatpush.msra.mxu0 %v854_v41  ;;  %v99_v9 = vsel %vm95_vm0, %v1571_v44, %v94_v4  ;;  %v874_v44 = vand.u32 4294901760, %v873_v12 }
 0x108   :  { %1073 = vmatpush.msra.mxu3 %v1072_v1  ;;  %107 = vst [vmem:[#allocation2 + $0x18] sm:$0xc0] %v99_v9  ;;  %908 = vmatpush.msrb.mxu2 %v871_v13  ;;  %v868_v2 = vand.u32 4294901760, %v867_v7  ;;  %v359_v10 = vld [vmem:[#allocation2 + $0x58] sm:$0xff] }
 0x109   :  { %111 = vst [vmem:[#allocation2 + $0x38] sm:$0x1] %v99_v9  ;;  %770 = vmatmul.f32.gmra.mxu2 %v1514_v6  ;;  %972 = vmatpush.msra.mxu0 %v860_v3  ;;  %v1033_v14 = vand.u32 4294901760, %v359_v10 }
 0x10a   :  { %1032 = vmatpush.msra.mxu2 %v1646_v8  ;;  %869 = vmatpush.msrb.mxu1 %v868_v2 }
 0x10b   :  { %976 = vmatpush.msra.mxu0 %v866_v62  ;;  %v1075_v40 = vsub.f32 %v359_v10, %v1033_v14 }
 0x10c   :  { %1034 = vmatpush.msra.mxu2 %v1033_v14  ;;  %875 = vmatpush.msrb.mxu1 %v874_v44 }
 0x10d   :  { %828 = vmatmul.f32.vlgmr.msrb.gmra.mxu0 %v1556_v23  ;;  %733 = vmatmul.f32.gmra.mxu1 %v1559_v32  ;;  %v1076_v42 = vand.u32 4294901760, %v1075_v40 }
 0x10e   :  { %980 = vmatpush.msra.mxu0 %v872_v63  ;;  %v56_v53 = vpop.permute.xlu0 %55  ;;  %1003 = vmatpush.msra.mxu1 %v1642_v36 }
 0x10f   :  { %799 = vmatmul.f32.gmra.mxu3 %v1514_v6  ;;  %v61_v57 = vsel %vm57_vm9, %v1594_v0, %v56_v53  ;;  %v1077_v17 = vsub.f32 %v1075_v40, %v1076_v42 }
 0x110   :  { %1115 = vmatpush.msrb.mxu0 %v1653_v39  ;;  %69 = vst [vmem:[#allocation2 + $0x18] sm:$0x38] %v61_v57  ;;  %v355_v18 = vld [vmem:[#allocation2 + $0x38] sm:$0xff]  ;;  %1005 = vmatpush.msra.mxu1 %v1628_v48 }
 0x111   :  { %911 = vmatmul.f32.vlgmr.msrb.gmra.mxu2 %v1490_v56  ;;  %v1035_v20 = vand.u32 4294901760, %v355_v18  ;;  %v1078_v21 = vand.u32 4294901760, %v1077_v17 }
 0x112   :  { %1118 = vmatpush.msrb.mxu0 %v1075_v40  ;;  %1007 = vmatpush.msra.mxu1 %v819_v55 }
 0x113   :  { %1036 = vmatpush.msra.mxu2 %v1035_v20  ;;  %v1081_v22 = vsub.f32 %v355_v18, %v1035_v20  ;;  %1079 = vmatpush.msra.mxu3 %v1078_v21 }
 0x114   :  { %1009 = vmatpush.msra.mxu1 %v1656_v43 }
 0x115   :  { %836 = vmatmul.f32.gmra.mxu0 %v1583_v59  ;;  %877 = vmatmul.f32.vlgmr.msrb.gmra.mxu1 %v1482_v52  ;;  %v1082_v0 = vand.u32 4294901760, %v1081_v22 }
 0x116   :  { %1121 = vmatpush.msrb.mxu0 %v1081_v22  ;;  %1149 = vmatpush.msrb.mxu1 %v1646_v8 }
 0x117   :  { %943 = vmatmul.f32.vlgmr.msrb.gmra.mxu3 %v1512_v5  ;;  %v351_v24 = vld [vmem:[#allocation2 + $0x18] sm:$0xff]  ;;  %v1083_v25 = vsub.f32 %v1081_v22, %v1082_v0 }
 0x118   :  { %v1037_v26 = vand.u32 4294901760, %v351_v24  ;;  %1151 = vmatpush.msrb.mxu1 %v1033_v14 }
 0x119   :  { %916 = vmatmul.f32.gmra.mxu2 %v1532_v15  ;;  %v1084_v48 = vand.u32 4294901760, %v1083_v25 }
 0x11a   :  { %1038 = vmatpush.msra.mxu2 %v1037_v26  ;;  %v1087_v11 = vsub.f32 %v351_v24, %v1037_v26  ;;  %1153 = vmatpush.msrb.mxu1 %v1035_v20 }
 0x11b   :  { %1085 = vmatpush.msra.mxu3 %v1084_v48 }
 0x11c   :  { %1184 = vmatpush.msrb.mxu2 %v1070_v50  ;;  %1124 = vmatpush.msrb.mxu0 %v1087_v11  ;;  %v1088_v45 = vand.u32 4294901760, %v1087_v11 }
 0x11d   :  { %1155 = vmatpush.msrb.mxu1 %v1037_v26  ;;  %982 = vmatmul.f32.vlgmr.msra.gmra.mxu0 %v1482_v52 }
 0x11e   :  { %881 = vmatmul.f32.gmra.mxu1 %v1514_v6  ;;  %1188 = vmatpush.msrb.mxu2 %v1076_v42  ;;  %v1089_v16 = vsub.f32 %v1087_v11, %v1088_v45 }
 0x11f   :  { %949 = vmatmul.f32.gmra.mxu3 %v1559_v32 }
 0x120   :  { %1192 = vmatpush.msrb.mxu2 %v1082_v0  ;;  %v1090_v28 = vand.u32 4294901760, %v1089_v16 }
 0x121   :  { %1044 = vmatmul.f32.vlgmr.msra.gmra.mxu2 %v1556_v23 }
 0x122   :  { %1196 = vmatpush.msrb.mxu2 %v1088_v45  ;;  %1091 = vmatpush.msra.mxu3 %v1090_v28 }
 0x124   :  { %1219 = vmatpush.msrb.mxu3 %v1646_v8 }
 0x125   :  { %986 = vmatmul.f32.gmra.mxu0 %v1514_v6 }
 0x126   :  { %1221 = vmatpush.msrb.mxu3 %v1033_v14  ;;  %1011 = vmatmul.f32.vlgmr.msra.gmra.mxu1 %v1482_v52 }
 0x127   :  { %1093 = vmatmul.f32.vlgmr.msra.gmra.mxu3 %v1482_v52 }
 0x128   :  { %1223 = vmatpush.msrb.mxu3 %v1035_v20 }
 0x129   :  { %1052 = vmatmul.f32.gmra.mxu2 %v1583_v59 }
 0x12a   :  { %1225 = vmatpush.msrb.mxu3 %v1037_v26 }
 0x12d   :  { %1127 = vmatmul.f32.vlgmr.msrb.gmra.mxu0 %v1490_v56 }
 0x12e   :  { %1015 = vmatmul.f32.gmra.mxu1 %v1514_v6 }
 0x12f   :  { %1097 = vmatmul.f32.gmra.mxu3 %v1514_v6 }
 0x131   :  { %1198 = vmatmul.f32.vlgmr.msrb.gmra.mxu2 %v1482_v52 }
 0x135   :  { %1132 = vmatmul.f32.gmra.mxu0 %v1532_v15 }
 0x136   :  { %1159 = vmatmul.f32.vlgmr.msrb.gmra.mxu1 %v1512_v5 }
 0x137   :  { %1227 = vmatmul.f32.vlgmr.msrb.gmra.mxu3 %v1482_v52 }
 0x139   :  { %1202 = vmatmul.f32.gmra.mxu2 %v1514_v6 }
 0x13e   :  { %1165 = vmatmul.f32.gmra.mxu1 %v1559_v32 }
 0x13f   :  { %1231 = vmatmul.f32.gmra.mxu3 %v1514_v6 }
 0x158   :  { %v397_v23 = vpop.f32.mrf.mxu0 }
 0x160   :  { %v446_v56 = vpop.f32.mrf.mxu1 }
 0x161   :  { %v447_v30 = vadd.f32 %v446_v56, %v397_v23 }
 0x162   :  { %v405_v59 = vpop.f32.mrf.mxu0  ;;  %v512_v27 = vpop.f32.mrf.mxu3 }
 0x163   :  { %v480_v31 = vpop.f32.mrf.mxu2 }
 0x164   :  { %v481_v33 = vadd.f32 %v480_v31, %v447_v30 }
 0x166   :  { %v513_v34 = vadd.f32 %v512_v27, %v481_v33 }
 0x169   :  { %v450_v15 = vpop.f32.mrf.mxu1 }
 0x16a   :  { %v551_v36 = vpop.f32.mrf.mxu0  ;;  %v451_v38 = vadd.f32 %v450_v15, %v405_v59  ;;  %v518_v52 = vpop.f32.mrf.mxu3 }
 0x16b   :  { %v485_v37 = vpop.f32.mrf.mxu2  ;;  %v552_v5 = vadd.f32 %v551_v36, %v513_v34 }
 0x16c   :  { %v486_v8 = vadd.f32 %v485_v37, %v451_v38 }
 0x16e   :  { %v519_v60 = vadd.f32 %v518_v52, %v486_v8 }
 0x171   :  { %v580_v32 = vpop.f32.mrf.mxu1 }
 0x172   :  { %v555_v3 = vpop.f32.mrf.mxu0  ;;  %v581_v6 = vadd.f32 %v580_v32, %v552_v5 }
 0x173   :  { %v556_v39 = vadd.f32 %v555_v3, %v519_v60  ;;  %v613_v41 = vpop.f32.mrf.mxu2 }
 0x179   :  { %v662_v43 = vpop.f32.mrf.mxu3  ;;  %v584_v47 = vpop.f32.mrf.mxu1 }
 0x17a   :  { %v696_v46 = vpop.f32.mrf.mxu0  ;;  %v663_v49 = vadd.f32 %v662_v43, %v613_v41  ;;  %v585_v50 = vadd.f32 %v584_v47, %v556_v39 }
 0x17b   :  { %v621_v51 = vpop.f32.mrf.mxu2 }
 0x17c   :  { %v1235_v54 = vmin.f32 %v581_v6, %v585_v50  ;;  %v697_v1 = vadd.f32 %v696_v46, %v663_v49 }
 0x17e   :  { %v1236_v10 = vrot.slane %v1235_v54, 4 }
 0x180   :  { %v1237_v53 = vmin.f32 %v1235_v54, %v1236_v10 }
 0x181   :  { %v666_v58 = vpop.f32.mrf.mxu3 }
 0x182   :  { %v701_v55 = vpop.f32.mrf.mxu0  ;;  %v728_v13 = vpop.f32.mrf.mxu1  ;;  %v667_v61 = vadd.f32 %v666_v58, %v621_v51  ;;  %v1238_v21 = vrot.slane %v1237_v53, 2 }
 0x183   :  { %v767_v35 = vpop.f32.mrf.mxu2  ;;  %v729_v9 = vadd.f32 %v728_v13, %v697_v1 }
 0x184   :  { %v702_v4 = vadd.f32 %v701_v55, %v667_v61  ;;  %v1239_v26 = vmin.f32 %v1237_v53, %v1238_v21 }
 0x185   :  { %v768_v12 = vadd.f32 %v767_v35, %v729_v9 }
 0x186   :  { %v1240_v28 = vrot.slane %v1239_v26, 1 }
 0x188   :  { %v1241_v30 = vmin.f32 %v1239_v26, %v1240_v28 }
 0x18a   :  { %v829_v19 = vpop.f32.mrf.mxu0  ;;  %v734_v62 = vpop.f32.mrf.mxu1 }
 0x18b   :  { %v796_v63 = vpop.f32.mrf.mxu3  ;;  %v735_v2 = vadd.f32 %v734_v62, %v702_v4 }
 0x18c   :  { %v771_v7 = vpop.f32.mrf.mxu2  ;;  %v797_v57 = vadd.f32 %v796_v63, %v768_v12 }
 0x18d   :  { %v772_v14 = vadd.f32 %v771_v7, %v735_v2 }
 0x192   :  { %v837_v40 = vpop.f32.mrf.mxu0  ;;  %v878_v42 = vpop.f32.mrf.mxu1 }
 0x193   :  { %v800_v44 = vpop.f32.mrf.mxu3  ;;  %v879_v37 = vadd.f32 %v878_v42, %v829_v19 }
 0x194   :  { %v801_v17 = vadd.f32 %v800_v44, %v772_v14  ;;  %v912_v18 = vpop.f32.mrf.mxu2 }
 0x195   :  { %v913_v60 = vadd.f32 %v912_v18, %v879_v37 }
 0x196   :  { %v1242_v20 = vmin.f32 %v797_v57, %v801_v17 }
 0x198   :  { %v1243_v22 = vrot.slane %v1242_v20, 4 }
 0x19a   :  { %v1244_v0 = vmin.f32 %v1242_v20, %v1243_v22  ;;  %v983_v25 = vpop.f32.mrf.mxu0 }
 0x19b   :  { %v944_v24 = vpop.f32.mrf.mxu3  ;;  %v882_v11 = vpop.f32.mrf.mxu1 }
 0x19c   :  { %v1245_v48 = vrot.slane %v1244_v0, 2  ;;  %v917_v45 = vpop.f32.mrf.mxu2  ;;  %v883_v15 = vadd.f32 %v882_v11, %v837_v40  ;;  %v945_v39 = vadd.f32 %v944_v24, %v913_v60 }
 0x19e   :  { %v1246_v16 = vmin.f32 %v1244_v0, %v1245_v48  ;;  %v918_v38 = vadd.f32 %v917_v45, %v883_v15  ;;  %v984_v43 = vadd.f32 %v983_v25, %v945_v39 }
 0x1a0   :  { %v1247_v23 = vrot.slane %v1246_v16, 1 }
 0x1a2   :  { %v1248_v56 = vmin.f32 %v1246_v16, %v1247_v23  ;;  %v987_v34 = vpop.f32.mrf.mxu0 }
 0x1a3   :  { %v950_v59 = vpop.f32.mrf.mxu3  ;;  %v1012_v27 = vpop.f32.mrf.mxu1 }
 0x1a4   :  { %v1267_v31 = vrot.slane %v1248_v56, 7  ;;  %v1045_v33 = vpop.f32.mrf.mxu2  ;;  %v951_v3 = vadd.f32 %v950_v59, %v918_v38  ;;  %v1013_v50 = vadd.f32 %v1012_v27, %v984_v43 }
 0x1a6   :  { %v1271_v36 = vsel %vm1270_vm10, %v1241_v30, %v1267_v31  ;;  %v988_v6 = vadd.f32 %v987_v34, %v951_v3 }
 0x1aa   :  { %v1128_v32 = vpop.f32.mrf.mxu0 }
 0x1ab   :  { %v1094_v5 = vpop.f32.mrf.mxu3  ;;  %v1016_v52 = vpop.f32.mrf.mxu1 }
 0x1ac   :  { %v1053_v8 = vpop.f32.mrf.mxu2  ;;  %v1017_v46 = vadd.f32 %v1016_v52, %v988_v6  ;;  %v1095_v54 = vadd.f32 %v1094_v5, %v1045_v33 }
 0x1ae   :  { %v1249_v51 = vmin.f32 %v1013_v50, %v1017_v46  ;;  %v1129_v61 = vadd.f32 %v1128_v32, %v1095_v54 }
 0x1b0   :  { %v1250_v35 = vrot.slane %v1249_v51, 4 }
 0x1b2   :  { %v1133_v58 = vpop.f32.mrf.mxu0  ;;  %v1251_v7 = vmin.f32 %v1249_v51, %v1250_v35 }
 0x1b3   :  { %v1098_v41 = vpop.f32.mrf.mxu3  ;;  %v1160_v47 = vpop.f32.mrf.mxu1 }
 0x1b4   :  { %v1199_v49 = vpop.f32.mrf.mxu2  ;;  %v1099_v55 = vadd.f32 %v1098_v41, %v1053_v8  ;;  %v1161_v63 = vadd.f32 %v1160_v47, %v1129_v61  ;;  %v1252_v12 = vrot.slane %v1251_v7, 2 }
 0x1b6   :  { %v1134_v19 = vadd.f32 %v1133_v58, %v1099_v55  ;;  %v1200_v9 = vadd.f32 %v1199_v49, %v1161_v63  ;;  %v1253_v42 = vmin.f32 %v1251_v7, %v1252_v12 }
 0x1b8   :  { %v1254_v17 = vrot.slane %v1253_v42, 1 }
 0x1ba   :  { %v1255_v21 = vmin.f32 %v1253_v42, %v1254_v17 }
 0x1bb   :  { %v1228_v13 = vpop.f32.mrf.mxu3  ;;  %v1166_v62 = vpop.f32.mrf.mxu1 }
 0x1bc   :  { %v1167_v1 = vadd.f32 %v1166_v62, %v1134_v19  ;;  %v1203_v4 = vpop.f32.mrf.mxu2  ;;  %v1229_v14 = vadd.f32 %v1228_v13, %v1200_v9  ;;  %v1268_v24 = vrot.slane %v1255_v21, 6 }
 0x1be   :  { %v1204_v2 = vadd.f32 %v1203_v4, %v1167_v1 }
 0x1c3   :  { %v1232_v10 = vpop.f32.mrf.mxu3 }
 0x1c4   :  { %v1233_v40 = vadd.f32 %v1232_v10, %v1204_v2 }
 0x1c6   :  { %v1256_v44 = vmin.f32 %v1229_v14, %v1233_v40 }
 0x1c8   :  { %v1257_v53 = vrot.slane %v1256_v44, 4 }
 0x1ca   :  { %v1258_v57 = vmin.f32 %v1256_v44, %v1257_v53 }
 0x1cc   :  { %v1259_v18 = vrot.slane %v1258_v57, 2 }
 0x1ce   :  { %v1260_v20 = vmin.f32 %v1258_v57, %v1259_v18 }
 0x1d0   :  { %v1261_v22 = vrot.slane %v1260_v20, 1 }
 0x1d2   :  { %v1262_v0 = vmin.f32 %v1260_v20, %v1261_v22 }
 0x1d4   :  { %v1269_v25 = vrot.slane %v1262_v0, 5 }
 0x1d6   :  { %v1273_v26 = vsel %vm1272_vm11, %v1268_v24, %v1269_v25 }
 0x1d7   :  { %v1275_v48 = vsel %vm1274_vm12, %v1271_v36, %v1273_v26 }
 0x1d8   :  { %1277 = vst.msk [vmem:[%s1726_s2] sm:$0xf] %vm1451_vm5, %v1275_v48 }

</bundles_post_ra>
